<compile_context>
chip_gen: v5e
topology: v5e:2x2
jax: 0.10.0
libtpu: 0.0.40
codegen_flags: <defaults>
</compile_context>

<pallas_src>
import functools

import jax
import jax.numpy as jnp
from jax import lax
from jax.experimental import pallas as pl
from jax.experimental.pallas import tpu as pltpu


def _round_up(x, m):
    return ((x + m - 1) // m) * m


def _vmem_limit_bytes():
    """Generation-aware VMEM limit: ~85% of physical capacity.

    Leaves headroom for compiler-internal scratch, semaphores and pipeline
    buffers (important on v7x's 64 MiB); uses most of v5e/v6e's 128 MiB.
    """
    cap = 128 * 1024 * 1024
    try:
        info = pltpu.get_tpu_info()
        cap = int(getattr(info, "vmem_capacity_bytes", cap) or cap)
    except Exception:
        pass
    return int(cap * 0.85)


def seq_model_kernel(x_ref, w1_ref, b1_ref, w2_ref, b2_ref, o_ref,
                     *, horizon, matmul_dtype):
    """One grid step = full horizon applied to one (TB, Dp) batch tile."""
    x = x_ref[...].astype(jnp.float32)

    def step(_, xc):
        # Read weights from the resident VMEM refs each iteration (no hoisted
        # loop-invariant copies -> less vreg/VMEM live range, zero extra HBM
        # traffic).  Bias rows (1, Hp)/(1, Dp) broadcast-add directly.
        h = jnp.dot(xc.astype(matmul_dtype), w1_ref[...],
                    preferred_element_type=jnp.float32) + b1_ref[...]
        h = jnp.maximum(h, 0.0)                                    # ReLU (f32)
        return jnp.dot(h.astype(matmul_dtype), w2_ref[...],
                       preferred_element_type=jnp.float32) + b2_ref[...]

    # Modest unroll for scheduler visibility on small horizons; rolled for long
    # horizons to bound code size / vreg pressure.
    x = lax.fori_loop(0, horizon, step, x, unroll=(horizon <= 8))
    o_ref[...] = x.astype(o_ref.dtype)


def sequential_model_forward(x, w1, b1, w2, b2, horizon,
                             *, tile_b=512, matmul_dtype=jnp.bfloat16):
    """Pad to MXU-friendly shapes, tile the batch adaptively, call the kernel.

    x:  (B, D)   float32
    w1: (H, D)   torch Linear weight layout (out, in)
    b1: (H,)
    w2: (D, H)
    b2: (D,)
    """
    B, D = x.shape
    H = w1.shape[0]

    # Lane-align feature dims.
    Dp = _round_up(D, 128)
    Hp = _round_up(H, 128)

    # Batch tiling: pad B only to a multiple of 8, pick TB adaptively via cdiv
    # (no near-2x padding blowup), and use >= 2 tiles whenever possible so the
    # "parallel" batch axis can shard across both v7x TensorCores.
    B8 = _round_up(B, 8)
    num_tiles = max(1, pl.cdiv(B8, tile_b))
    if num_tiles == 1 and B8 >= 16:
        num_tiles = 2
    TB = _round_up(pl.cdiv(B8, num_tiles), 8)
    Bp = TB * num_tiles

    # Zero-pad.  Padded columns of x stay exactly zero through every horizon
    # step because the padded weight rows/cols and bias entries are zero.
    # Weights are cast to the matmul dtype HERE (halves DMA bytes + resident
    # VMEM for the bf16 default); biases stay f32 for the f32 epilogue.
    wdt = matmul_dtype
    x_p = jnp.zeros((Bp, Dp), jnp.float32).at[:B, :D].set(x.astype(jnp.float32))
    w1_t = jnp.zeros((Dp, Hp), wdt).at[:D, :H].set(jnp.transpose(w1).astype(wdt))
    b1_r = jnp.zeros((1, Hp), jnp.float32).at[0, :H].set(b1)
    w2_t = jnp.zeros((Hp, Dp), wdt).at[:H, :D].set(jnp.transpose(w2).astype(wdt))
    b2_r = jnp.zeros((1, Dp), jnp.float32).at[0, :D].set(b2)

    kernel = functools.partial(seq_model_kernel, horizon=horizon,
                               matmul_dtype=matmul_dtype)

    # Advisory cost: 2 matmuls per horizon step over the padded shapes.
    wbytes = jnp.dtype(wdt).itemsize
    flops = 2 * Bp * horizon * (Dp * Hp + Hp * Dp)
    bytes_accessed = (4 * Bp * Dp                 # x in
                      + wbytes * 2 * Dp * Hp      # weights (bf16 by default)
                      + 4 * (Hp + Dp)             # biases
                      + 4 * Bp * Dp)              # out
    cost = pl.CostEstimate(flops=flops, transcendentals=0,
                           bytes_accessed=bytes_accessed)

    def _build(use_single_buffered_residents):
        def resident_spec(shape):
            if use_single_buffered_residents:
                return pl.BlockSpec(shape, lambda i: (0, 0),
                                    pipeline_mode=pl.Buffered(1))
            return pl.BlockSpec(shape, lambda i: (0, 0))

        return pl.pallas_call(
            kernel,
            out_shape=jax.ShapeDtypeStruct((Bp, Dp), jnp.float32),
            grid_spec=pltpu.PrefetchScalarGridSpec(
                num_scalar_prefetch=0,
                grid=(num_tiles,),
                in_specs=[
                    pl.BlockSpec((TB, Dp), lambda i: (i, 0)),  # x tile (pipelined)
                    resident_spec((Dp, Hp)),                   # w1 (resident)
                    resident_spec((1, Hp)),                    # b1 (resident)
                    resident_spec((Hp, Dp)),                   # w2 (resident)
                    resident_spec((1, Dp)),                    # b2 (resident)
                ],
                out_specs=pl.BlockSpec((TB, Dp), lambda i: (i, 0)),
            ),
            compiler_params=pltpu.CompilerParams(
                dimension_semantics=("parallel",),     # shard batch tiles across TCs
                vmem_limit_bytes=_vmem_limit_bytes(),  # generation-aware budget
            ),
            cost_estimate=cost,
        )

    try:
        out = _build(True)(x_p, w1_t, b1_r, w2_t, b2_r)
    except Exception:
        # Fallback if pipeline_mode=pl.Buffered(1) is rejected by this JAX build.
        out = _build(False)(x_p, w1_t, b1_r, w2_t, b2_r)

    return out[:B, :D].astype(x.dtype)


def _ref_forward(x, w1, b1, w2, b2, horizon):
    """Pure-JAX reference matching torch semantics (x @ W.T + b)."""
    for _ in range(horizon):
        h = jnp.maximum(x @ w1.T + b1, 0.0)
        x = h @ w2.T + b2
    return x


if __name__ == "__main__":
    # Small shapes consistent with a Linear/ReLU base model applied N times.
    # B=16 so the wrapper's >=2-tile (megacore) path is exercised.
    B, D, H, N = 16, 4, 32, 3

    key = jax.random.PRNGKey(0)
    k1, k2, k3, k4, kx = jax.random.split(key, 5)

    # Deterministic init mimicking torch.nn.Linear default (uniform ±1/sqrt(fan_in)).
    w1 = jax.random.uniform(k1, (H, D), jnp.float32, -1.0 / jnp.sqrt(D), 1.0 / jnp.sqrt(D))
    b1 = jax.random.uniform(k2, (H,), jnp.float32, -1.0 / jnp.sqrt(D), 1.0 / jnp.sqrt(D))
    w2 = jax.random.uniform(k3, (D, H), jnp.float32, -1.0 / jnp.sqrt(H), 1.0 / jnp.sqrt(H))
    b2 = jax.random.uniform(k4, (D,), jnp.float32, -1.0 / jnp.sqrt(H), 1.0 / jnp.sqrt(H))

    x = jax.random.normal(kx, (B, D), jnp.float32)

    ref = _ref_forward(x, w1, b1, w2, b2, horizon=N)

    # Default bf16 MXU path: error compounds across the recurrent horizon, so
    # use a horizon-scaled tolerance.
    out_bf16 = sequential_model_forward(x, w1, b1, w2, b2, horizon=N)
    out_bf16 = jax.block_until_ready(out_bf16)
    assert out_bf16.shape == (B, D)
    tol = 2e-2 * N
    assert jnp.allclose(out_bf16, ref, atol=tol, rtol=tol), "bf16 path mismatch"

    # f32 matmul path validates the kernel structure / recurrence tightly.
    out_f32 = sequential_model_forward(x, w1, b1, w2, b2, horizon=N,
                                       matmul_dtype=jnp.float32)
    out_f32 = jax.block_until_ready(out_f32)
    assert jnp.allclose(out_f32, ref, atol=1e-5, rtol=1e-5), "f32 path mismatch"

    print("KERNEL_OK")
</pallas_src>

<mosaic_0001>
module attributes {stable_mosaic.version = 11 : i64} {
  func.func @seq_model_kernel(%arg0: i32, %arg1: memref<8x128xf32, #tpu.memory_space<vmem>>, %arg2: memref<128x128xbf16, #tpu.memory_space<vmem>>, %arg3: memref<1x128xf32, #tpu.memory_space<vmem>>, %arg4: memref<128x128xbf16, #tpu.memory_space<vmem>>, %arg5: memref<1x128xf32, #tpu.memory_space<vmem>>, %arg6: memref<8x128xf32, #tpu.memory_space<vmem>>) attributes {dimension_semantics = [#tpu.dimension_semantics<parallel>], iteration_bounds = array<i64: 2>, scalar_prefetch = 0 : i64, scratch_operands = 0 : i64, tpu.core_type = #tpu.core_type<tc>, window_params = [{transform_indices = @transform_0, window_bounds = array<i64: 8, 128>}, {pipeline_mode = #tpu.pipeline_mode<synchronous>, transform_indices = @transform_1, window_bounds = array<i64: 128, 128>}, {pipeline_mode = #tpu.pipeline_mode<synchronous>, transform_indices = @transform_2, window_bounds = array<i64: 1, 128>}, {pipeline_mode = #tpu.pipeline_mode<synchronous>, transform_indices = @transform_3, window_bounds = array<i64: 128, 128>}, {pipeline_mode = #tpu.pipeline_mode<synchronous>, transform_indices = @transform_4, window_bounds = array<i64: 1, 128>}, {transform_indices = @transform_5, window_bounds = array<i64: 8, 128>}]} {
    %c0 = arith.constant 0 : index
    %c0_0 = arith.constant 0 : index
    %0 = vector.load %arg1[%c0, %c0_0] : memref<8x128xf32, #tpu.memory_space<vmem>>, vector<8x128xf32>
    %c0_i32 = arith.constant 0 : i32
    %1 = arith.truncf %0 : vector<8x128xf32> to vector<8x128xbf16>
    %c0_1 = arith.constant 0 : index
    %c0_2 = arith.constant 0 : index
    %2 = vector.load %arg2[%c0_1, %c0_2] : memref<128x128xbf16, #tpu.memory_space<vmem>>, vector<128x128xbf16>
    %cst = arith.constant dense<0.000000e+00> : vector<8x128xf32>
    %3 = tpu.matmul %1, %2, %cst {dimension_numbers = #tpu.dot_dimension_numbers<[1], [0], [0], [1], [0, 0, 1, 1], [], []>} : vector<8x128xbf16>, vector<128x128xbf16>, vector<8x128xf32> -> vector<8x128xf32>
    %c0_3 = arith.constant 0 : index
    %c0_4 = arith.constant 0 : index
    %4 = vector.load %arg3[%c0_3, %c0_4] : memref<1x128xf32, #tpu.memory_space<vmem>>, vector<1x128xf32>
    %5 = vector.broadcast %4 : vector<1x128xf32> to vector<8x128xf32>
    %6 = arith.addf %3, %5 : vector<8x128xf32>
    %cst_5 = arith.constant 0.000000e+00 : f32
    %7 = vector.broadcast %cst_5 : f32 to vector<8x128xf32>
    %8 = arith.maximumf %6, %7 : vector<8x128xf32>
    %9 = arith.truncf %8 : vector<8x128xf32> to vector<8x128xbf16>
    %c0_6 = arith.constant 0 : index
    %c0_7 = arith.constant 0 : index
    %10 = vector.load %arg4[%c0_6, %c0_7] : memref<128x128xbf16, #tpu.memory_space<vmem>>, vector<128x128xbf16>
    %cst_8 = arith.constant dense<0.000000e+00> : vector<8x128xf32>
    %11 = tpu.matmul %9, %10, %cst_8 {dimension_numbers = #tpu.dot_dimension_numbers<[1], [0], [0], [1], [0, 0, 1, 1], [], []>} : vector<8x128xbf16>, vector<128x128xbf16>, vector<8x128xf32> -> vector<8x128xf32>
    %c0_9 = arith.constant 0 : index
    %c0_10 = arith.constant 0 : index
    %12 = vector.load %arg5[%c0_9, %c0_10] : memref<1x128xf32, #tpu.memory_space<vmem>>, vector<1x128xf32>
    %13 = vector.broadcast %12 : vector<1x128xf32> to vector<8x128xf32>
    %14 = arith.addf %11, %13 : vector<8x128xf32>
    %c1_i32 = arith.constant 1 : i32
    %15 = arith.truncf %14 : vector<8x128xf32> to vector<8x128xbf16>
    %c0_11 = arith.constant 0 : index
    %c0_12 = arith.constant 0 : index
    %16 = vector.load %arg2[%c0_11, %c0_12] : memref<128x128xbf16, #tpu.memory_space<vmem>>, vector<128x128xbf16>
    %cst_13 = arith.constant dense<0.000000e+00> : vector<8x128xf32>
    %17 = tpu.matmul %15, %16, %cst_13 {dimension_numbers = #tpu.dot_dimension_numbers<[1], [0], [0], [1], [0, 0, 1, 1], [], []>} : vector<8x128xbf16>, vector<128x128xbf16>, vector<8x128xf32> -> vector<8x128xf32>
    %c0_14 = arith.constant 0 : index
    %c0_15 = arith.constant 0 : index
    %18 = vector.load %arg3[%c0_14, %c0_15] : memref<1x128xf32, #tpu.memory_space<vmem>>, vector<1x128xf32>
    %19 = vector.broadcast %18 : vector<1x128xf32> to vector<8x128xf32>
    %20 = arith.addf %17, %19 : vector<8x128xf32>
    %cst_16 = arith.constant 0.000000e+00 : f32
    %21 = vector.broadcast %cst_16 : f32 to vector<8x128xf32>
    %22 = arith.maximumf %20, %21 : vector<8x128xf32>
    %23 = arith.truncf %22 : vector<8x128xf32> to vector<8x128xbf16>
    %c0_17 = arith.constant 0 : index
    %c0_18 = arith.constant 0 : index
    %24 = vector.load %arg4[%c0_17, %c0_18] : memref<128x128xbf16, #tpu.memory_space<vmem>>, vector<128x128xbf16>
    %cst_19 = arith.constant dense<0.000000e+00> : vector<8x128xf32>
    %25 = tpu.matmul %23, %24, %cst_19 {dimension_numbers = #tpu.dot_dimension_numbers<[1], [0], [0], [1], [0, 0, 1, 1], [], []>} : vector<8x128xbf16>, vector<128x128xbf16>, vector<8x128xf32> -> vector<8x128xf32>
    %c0_20 = arith.constant 0 : index
    %c0_21 = arith.constant 0 : index
    %26 = vector.load %arg5[%c0_20, %c0_21] : memref<1x128xf32, #tpu.memory_space<vmem>>, vector<1x128xf32>
    %27 = vector.broadcast %26 : vector<1x128xf32> to vector<8x128xf32>
    %28 = arith.addf %25, %27 : vector<8x128xf32>
    %c2_i32 = arith.constant 2 : i32
    %29 = arith.truncf %28 : vector<8x128xf32> to vector<8x128xbf16>
    %c0_22 = arith.constant 0 : index
    %c0_23 = arith.constant 0 : index
    %30 = vector.load %arg2[%c0_22, %c0_23] : memref<128x128xbf16, #tpu.memory_space<vmem>>, vector<128x128xbf16>
    %cst_24 = arith.constant dense<0.000000e+00> : vector<8x128xf32>
    %31 = tpu.matmul %29, %30, %cst_24 {dimension_numbers = #tpu.dot_dimension_numbers<[1], [0], [0], [1], [0, 0, 1, 1], [], []>} : vector<8x128xbf16>, vector<128x128xbf16>, vector<8x128xf32> -> vector<8x128xf32>
    %c0_25 = arith.constant 0 : index
    %c0_26 = arith.constant 0 : index
    %32 = vector.load %arg3[%c0_25, %c0_26] : memref<1x128xf32, #tpu.memory_space<vmem>>, vector<1x128xf32>
    %33 = vector.broadcast %32 : vector<1x128xf32> to vector<8x128xf32>
    %34 = arith.addf %31, %33 : vector<8x128xf32>
    %cst_27 = arith.constant 0.000000e+00 : f32
    %35 = vector.broadcast %cst_27 : f32 to vector<8x128xf32>
    %36 = arith.maximumf %34, %35 : vector<8x128xf32>
    %37 = arith.truncf %36 : vector<8x128xf32> to vector<8x128xbf16>
    %c0_28 = arith.constant 0 : index
    %c0_29 = arith.constant 0 : index
    %38 = vector.load %arg4[%c0_28, %c0_29] : memref<128x128xbf16, #tpu.memory_space<vmem>>, vector<128x128xbf16>
    %cst_30 = arith.constant dense<0.000000e+00> : vector<8x128xf32>
    %39 = tpu.matmul %37, %38, %cst_30 {dimension_numbers = #tpu.dot_dimension_numbers<[1], [0], [0], [1], [0, 0, 1, 1], [], []>} : vector<8x128xbf16>, vector<128x128xbf16>, vector<8x128xf32> -> vector<8x128xf32>
    %c0_31 = arith.constant 0 : index
    %c0_32 = arith.constant 0 : index
    %40 = vector.load %arg5[%c0_31, %c0_32] : memref<1x128xf32, #tpu.memory_space<vmem>>, vector<1x128xf32>
    %41 = vector.broadcast %40 : vector<1x128xf32> to vector<8x128xf32>
    %42 = arith.addf %39, %41 : vector<8x128xf32>
    %c0_33 = arith.constant 0 : index
    %c0_34 = arith.constant 0 : index
    %43 = vector.load %arg6[%c0_33, %c0_34] : memref<8x128xf32, #tpu.memory_space<vmem>>, vector<8x128xf32>
    tpu.vector_store %arg6[%c0_33, %c0_34], %42 {strides = array<i32>} : memref<8x128xf32, #tpu.memory_space<vmem>>, vector<8x128xf32>,
    return
  }
  func.func @transform_0(%arg0: i32) -> (i32, i32) {
    %c0_i32 = arith.constant 0 : i32
    %c0_i32_0 = arith.constant 0 : i32
    return %arg0, %c0_i32 : i32, i32
  }
  func.func @transform_1(%arg0: i32) -> (i32, i32) {
    %c0_i32 = arith.constant 0 : i32
    %c0_i32_0 = arith.constant 0 : i32
    %c0_i32_1 = arith.constant 0 : i32
    return %c0_i32, %c0_i32_0 : i32, i32
  }
  func.func @transform_2(%arg0: i32) -> (i32, i32) {
    %c0_i32 = arith.constant 0 : i32
    %c0_i32_0 = arith.constant 0 : i32
    %c0_i32_1 = arith.constant 0 : i32
    return %c0_i32, %c0_i32_0 : i32, i32
  }
  func.func @transform_3(%arg0: i32) -> (i32, i32) {
    %c0_i32 = arith.constant 0 : i32
    %c0_i32_0 = arith.constant 0 : i32
    %c0_i32_1 = arith.constant 0 : i32
    return %c0_i32, %c0_i32_0 : i32, i32
  }
  func.func @transform_4(%arg0: i32) -> (i32, i32) {
    %c0_i32 = arith.constant 0 : i32
    %c0_i32_0 = arith.constant 0 : i32
    %c0_i32_1 = arith.constant 0 : i32
    return %c0_i32, %c0_i32_0 : i32, i32
  }
  func.func @transform_5(%arg0: i32) -> (i32, i32) {
    %c0_i32 = arith.constant 0 : i32
    %c0_i32_0 = arith.constant 0 : i32
    return %arg0, %c0_i32 : i32, i32
  }
}

module attributes {stable_mosaic.version = 11 : i64} {
  func.func @seq_model_kernel(%arg0: i32, %arg1: memref<8x128xf32, #tpu.memory_space<vmem>>, %arg2: memref<128x128xbf16, #tpu.memory_space<vmem>>, %arg3: memref<1x128xf32, #tpu.memory_space<vmem>>, %arg4: memref<128x128xbf16, #tpu.memory_space<vmem>>, %arg5: memref<1x128xf32, #tpu.memory_space<vmem>>, %arg6: memref<8x128xf32, #tpu.memory_space<vmem>>) attributes {dimension_semantics = [#tpu.dimension_semantics<parallel>], iteration_bounds = array<i64: 2>, scalar_prefetch = 0 : i64, scratch_operands = 0 : i64, tpu.core_type = #tpu.core_type<tc>, window_params = [{transform_indices = @transform_0, window_bounds = array<i64: 8, 128>}, {pipeline_mode = #tpu.pipeline_mode<synchronous>, transform_indices = @transform_1, window_bounds = array<i64: 128, 128>}, {pipeline_mode = #tpu.pipeline_mode<synchronous>, transform_indices = @transform_2, window_bounds = array<i64: 1, 128>}, {pipeline_mode = #tpu.pipeline_mode<synchronous>, transform_indices = @transform_3, window_bounds = array<i64: 128, 128>}, {pipeline_mode = #tpu.pipeline_mode<synchronous>, transform_indices = @transform_4, window_bounds = array<i64: 1, 128>}, {transform_indices = @transform_5, window_bounds = array<i64: 8, 128>}]} {
    %c0 = arith.constant 0 : index
    %c0_0 = arith.constant 0 : index
    %0 = vector.load %arg1[%c0, %c0_0] : memref<8x128xf32, #tpu.memory_space<vmem>>, vector<8x128xf32>
    %c0_i32 = arith.constant 0 : i32
    %1 = arith.truncf %0 : vector<8x128xf32> to vector<8x128xbf16>
    %c0_1 = arith.constant 0 : index
    %c0_2 = arith.constant 0 : index
    %2 = vector.load %arg2[%c0_1, %c0_2] : memref<128x128xbf16, #tpu.memory_space<vmem>>, vector<128x128xbf16>
    %cst = arith.constant dense<0.000000e+00> : vector<8x128xf32>
    %3 = tpu.matmul %1, %2, %cst {dimension_numbers = #tpu.dot_dimension_numbers<[1], [0], [0], [1], [0, 0, 1, 1], [], []>} : vector<8x128xbf16>, vector<128x128xbf16>, vector<8x128xf32> -> vector<8x128xf32>
    %c0_3 = arith.constant 0 : index
    %c0_4 = arith.constant 0 : index
    %4 = vector.load %arg3[%c0_3, %c0_4] : memref<1x128xf32, #tpu.memory_space<vmem>>, vector<1x128xf32>
    %5 = vector.broadcast %4 : vector<1x128xf32> to vector<8x128xf32>
    %6 = arith.addf %3, %5 : vector<8x128xf32>
    %cst_5 = arith.constant 0.000000e+00 : f32
    %7 = vector.broadcast %cst_5 : f32 to vector<8x128xf32>
    %8 = arith.maximumf %6, %7 : vector<8x128xf32>
    %9 = arith.truncf %8 : vector<8x128xf32> to vector<8x128xbf16>
    %c0_6 = arith.constant 0 : index
    %c0_7 = arith.constant 0 : index
    %10 = vector.load %arg4[%c0_6, %c0_7] : memref<128x128xbf16, #tpu.memory_space<vmem>>, vector<128x128xbf16>
    %cst_8 = arith.constant dense<0.000000e+00> : vector<8x128xf32>
    %11 = tpu.matmul %9, %10, %cst_8 {dimension_numbers = #tpu.dot_dimension_numbers<[1], [0], [0], [1], [0, 0, 1, 1], [], []>} : vector<8x128xbf16>, vector<128x128xbf16>, vector<8x128xf32> -> vector<8x128xf32>
    %c0_9 = arith.constant 0 : index
    %c0_10 = arith.constant 0 : index
    %12 = vector.load %arg5[%c0_9, %c0_10] : memref<1x128xf32, #tpu.memory_space<vmem>>, vector<1x128xf32>
    %13 = vector.broadcast %12 : vector<1x128xf32> to vector<8x128xf32>
    %14 = arith.addf %11, %13 : vector<8x128xf32>
    %c1_i32 = arith.constant 1 : i32
    %15 = arith.truncf %14 : vector<8x128xf32> to vector<8x128xbf16>
    %c0_11 = arith.constant 0 : index
    %c0_12 = arith.constant 0 : index
    %16 = vector.load %arg2[%c0_11, %c0_12] : memref<128x128xbf16, #tpu.memory_space<vmem>>, vector<128x128xbf16>
    %cst_13 = arith.constant dense<0.000000e+00> : vector<8x128xf32>
    %17 = tpu.matmul %15, %16, %cst_13 {dimension_numbers = #tpu.dot_dimension_numbers<[1], [0], [0], [1], [0, 0, 1, 1], [], []>} : vector<8x128xbf16>, vector<128x128xbf16>, vector<8x128xf32> -> vector<8x128xf32>
    %c0_14 = arith.constant 0 : index
    %c0_15 = arith.constant 0 : index
    %18 = vector.load %arg3[%c0_14, %c0_15] : memref<1x128xf32, #tpu.memory_space<vmem>>, vector<1x128xf32>
    %19 = vector.broadcast %18 : vector<1x128xf32> to vector<8x128xf32>
    %20 = arith.addf %17, %19 : vector<8x128xf32>
    %cst_16 = arith.constant 0.000000e+00 : f32
    %21 = vector.broadcast %cst_16 : f32 to vector<8x128xf32>
    %22 = arith.maximumf %20, %21 : vector<8x128xf32>
    %23 = arith.truncf %22 : vector<8x128xf32> to vector<8x128xbf16>
    %c0_17 = arith.constant 0 : index
    %c0_18 = arith.constant 0 : index
    %24 = vector.load %arg4[%c0_17, %c0_18] : memref<128x128xbf16, #tpu.memory_space<vmem>>, vector<128x128xbf16>
    %cst_19 = arith.constant dense<0.000000e+00> : vector<8x128xf32>
    %25 = tpu.matmul %23, %24, %cst_19 {dimension_numbers = #tpu.dot_dimension_numbers<[1], [0], [0], [1], [0, 0, 1, 1], [], []>} : vector<8x128xbf16>, vector<128x128xbf16>, vector<8x128xf32> -> vector<8x128xf32>
    %c0_20 = arith.constant 0 : index
    %c0_21 = arith.constant 0 : index
    %26 = vector.load %arg5[%c0_20, %c0_21] : memref<1x128xf32, #tpu.memory_space<vmem>>, vector<1x128xf32>
    %27 = vector.broadcast %26 : vector<1x128xf32> to vector<8x128xf32>
    %28 = arith.addf %25, %27 : vector<8x128xf32>
    %c2_i32 = arith.constant 2 : i32
    %29 = arith.truncf %28 : vector<8x128xf32> to vector<8x128xbf16>
    %c0_22 = arith.constant 0 : index
    %c0_23 = arith.constant 0 : index
    %30 = vector.load %arg2[%c0_22, %c0_23] : memref<128x128xbf16, #tpu.memory_space<vmem>>, vector<128x128xbf16>
    %cst_24 = arith.constant dense<0.000000e+00> : vector<8x128xf32>
    %31 = tpu.matmul %29, %30, %cst_24 {dimension_numbers = #tpu.dot_dimension_numbers<[1], [0], [0], [1], [0, 0, 1, 1], [], []>} : vector<8x128xbf16>, vector<128x128xbf16>, vector<8x128xf32> -> vector<8x128xf32>
    %c0_25 = arith.constant 0 : index
    %c0_26 = arith.constant 0 : index
    %32 = vector.load %arg3[%c0_25, %c0_26] : memref<1x128xf32, #tpu.memory_space<vmem>>, vector<1x128xf32>
    %33 = vector.broadcast %32 : vector<1x128xf32> to vector<8x128xf32>
    %34 = arith.addf %31, %33 : vector<8x128xf32>
    %cst_27 = arith.constant 0.000000e+00 : f32
    %35 = vector.broadcast %cst_27 : f32 to vector<8x128xf32>
    %36 = arith.maximumf %34, %35 : vector<8x128xf32>
    %37 = arith.truncf %36 : vector<8x128xf32> to vector<8x128xbf16>
    %c0_28 = arith.constant 0 : index
    %c0_29 = arith.constant 0 : index
    %38 = vector.load %arg4[%c0_28, %c0_29] : memref<128x128xbf16, #tpu.memory_space<vmem>>, vector<128x128xbf16>
    %cst_30 = arith.constant dense<0.000000e+00> : vector<8x128xf32>
    %39 = tpu.matmul %37, %38, %cst_30 {dimension_numbers = #tpu.dot_dimension_numbers<[1], [0], [0], [1], [0, 0, 1, 1], [], []>} : vector<8x128xbf16>, vector<128x128xbf16>, vector<8x128xf32> -> vector<8x128xf32>
    %c0_31 = arith.constant 0 : index
    %c0_32 = arith.constant 0 : index
    %40 = vector.load %arg5[%c0_31, %c0_32] : memref<1x128xf32, #tpu.memory_space<vmem>>, vector<1x128xf32>
    %41 = vector.broadcast %40 : vector<1x128xf32> to vector<8x128xf32>
    %42 = arith.addf %39, %41 : vector<8x128xf32>
    %c0_33 = arith.constant 0 : index
    %c0_34 = arith.constant 0 : index
    %43 = vector.load %arg6[%c0_33, %c0_34] : memref<8x128xf32, #tpu.memory_space<vmem>>, vector<8x128xf32>
    tpu.vector_store %arg6[%c0_33, %c0_34], %42 {strides = array<i32>} : memref<8x128xf32, #tpu.memory_space<vmem>>, vector<8x128xf32>,
    return
  }
  func.func @transform_0(%arg0: i32) -> (i32, i32) {
    %c0_i32 = arith.constant 0 : i32
    %c0_i32_0 = arith.constant 0 : i32
    return %arg0, %c0_i32 : i32, i32
  }
  func.func @transform_1(%arg0: i32) -> (i32, i32) {
    %c0_i32 = arith.constant 0 : i32
    %c0_i32_0 = arith.constant 0 : i32
    %c0_i32_1 = arith.constant 0 : i32
    return %c0_i32, %c0_i32_0 : i32, i32
  }
  func.func @transform_2(%arg0: i32) -> (i32, i32) {
    %c0_i32 = arith.constant 0 : i32
    %c0_i32_0 = arith.constant 0 : i32
    %c0_i32_1 = arith.constant 0 : i32
    return %c0_i32, %c0_i32_0 : i32, i32
  }
  func.func @transform_3(%arg0: i32) -> (i32, i32) {
    %c0_i32 = arith.constant 0 : i32
    %c0_i32_0 = arith.constant 0 : i32
    %c0_i32_1 = arith.constant 0 : i32
    return %c0_i32, %c0_i32_0 : i32, i32
  }
  func.func @transform_4(%arg0: i32) -> (i32, i32) {
    %c0_i32 = arith.constant 0 : i32
    %c0_i32_0 = arith.constant 0 : i32
    %c0_i32_1 = arith.constant 0 : i32
    return %c0_i32, %c0_i32_0 : i32, i32
  }
  func.func @transform_5(%arg0: i32) -> (i32, i32) {
    %c0_i32 = arith.constant 0 : i32
    %c0_i32_0 = arith.constant 0 : i32
    return %arg0, %c0_i32 : i32, i32
  }
}

</mosaic_0001>

<bundles_post_ra>
// kernel: tpu_custom_call.1
= control target key start
LH: loop header
LB: loop body
LE: loop exit
PB: predicated region body
PF: predicated region fallthrough
CT: control target
= control target key end

     0   :  { %10 = vsyncpa [#allocation3], 0  ;;  %s1126_s0 = inlined_call_operand.hbm [shape: f32[16,128], index: 0, kind: input, shape index: {}]   ;;  %s1127_s1 = inlined_call_operand.hbm [shape: bf16[128,128], index: 1, kind: input, shape index: {}]   ;;  %s1128_s2 = inlined_call_operand.vmem [shape: f32[1,128], index: 2, kind: input, shape index: {}]   ;;  %s1129_s3 = inlined_call_operand.hbm [shape: bf16[128,128], index: 3, kind: input, shape index: {}]   ;;  %s1130_s4 = inlined_call_operand.vmem [shape: f32[1,128], index: 4, kind: input, shape index: {}]   ;;  %s1131_s5 = inlined_call_operand.hbm [shape: f32[16,128], index: 5, kind: output, shape index: {}]  }
   0x1   :  { %12 = vsyncpa [#allocation3 + $0x1], 0 }
   0x2   :  { %13 = vsyncpa [#allocation6], 0 }
   0x3   :  { %14 = vsyncpa [#allocation4], 0 }
   0x4   :  { %16 = vsyncpa [#allocation4 + $0x1], 0  ;;  %s968_s18 = smov 0   ;;  %s970_s19 = smov 0  }
   0x5   :  { %s972_s20 = smov 0   ;;  %s974_s21 = smov 0  }
   0x6 LB: > { %s174_s24 = sshll.u32 %s1127_s1, 4  ;;  %s992_s25 = sadd.s32 4294967295, %s932_s21   ;;  %s932_s21 = sphi %s974_s21, %s1142_s21   ;;  %s928_s20 = sphi %s972_s20, %s1141_s20   ;;  %s924_s19 = sphi %s970_s19, %s1140_s19   ;;  %s920_s18 = sphi %s968_s18, %s1139_s18   ;;  %s175_s24 = int_to_ptr.hbm [resolvable:$true] %s174_s24 }
   0x7   : > { %p606_p0 = scmp.ge.s32.totalorder %s932_s21, 1  ;;  %p43_p1 = scmp.eq.s32.totalorder %s992_s25, 0 }
   0x8   : > { %p163_p2 = scmp.lt.s32.totalorder %s932_s21, 3  ;;  %s934_s27 = smov [#allocation5]  }
   0x9   : > { %s176_s28 = sshll.u32 %s934_s27, 4  ;;  %s191_s6 = sshll.u32 %s1129_s3, 4  ;;  %s177_s28 = int_to_ptr.vmem [resolvable:$true] %s176_s28  ;;  %s192_s6 = int_to_ptr.hbm [resolvable:$true] %s191_s6 }
   0xa   : > { %p997_p3 = pnand %p606_p0, %p163_p2  ;;  %s935_s7 = smov [#allocation7]  }
   0xb   : > { %s193_s8 = sshll.u32 %s935_s7, 4  ;;  %s936_s9 = smov 64   ;;  %s194_s8 = int_to_ptr.vmem [resolvable:$true] %s193_s8 }
   0xc   : > { %p713_p4 = pneg %p997_p3  ;;  %s937_s10 = smov 4  }
   0xd   : > { %s605_s11 = sadd.s32 4294967294, %s932_s21   ;;  %s1011_s12 = sadd.s32 1, %s932_s21  }
   0xe   : > { %p714_p6 = pnand %p713_p4, %p43_p1  ;;  %s26_s13 = ssub.s32 %s932_s21, %s1011_s12 }
   0xf   : > { %s29_s14 = sadd.s32 1, %s928_s20  ;;  %p27_p7 = scmp.eq.s32.totalorder %s26_s13, 0 }
  0x10   : > { %716 = dma.hbm_to_vmem [thread:$0]  (!%p714_p6), %s175_s24, 1024, %s177_s28, [#allocation6], %s936_s9, %s936_s9, %s937_s10  }
  0x11   : > { %719 = dma.hbm_to_vmem [thread:$0]  (!%p714_p6), %s192_s6, 1024, %s194_s8, [#allocation6], %s936_s9, %s936_s9, %s937_s10  }
  0x12   : > { %p36_p8 = scmp.ne.s32.totalorder %s928_s20, %s924_s19  ;;  %p37_p9 = scmp.eq.s32.totalorder %s932_s21, 0 }
  0x13   : > { %p42_p10 = scmp.ne.s32.totalorder %s924_s19, %s920_s18  ;;  %p150_p13 = scmp.eq.s32.totalorder %s992_s25, 1 }
  0x14   : > { %s1022_s15 = scalar_select %p27_p7, %s928_s20, %s29_s14  }
  0x15   : > { %p1024_p11 = por %p37_p9, %p36_p8  ;;  %p1030_p12 = por %p43_p1, %p42_p10 }
  0x16   : > { %p156_p0 = scmp.eq.s32.totalorder %s605_s11, 1  ;;  %p730_p2 = scmp.lt.s32.totalorder %s932_s21, 2 }
  0x17   : > { %s210_s22 = sand.u32 1, %s928_s20   ;;  %p1037_p4 = por %p150_p13, %p36_p8 }
  0x18   : > { %p1041_p6 = por %p156_p0, %p42_p10  ;;  %s610_s27 = sshll.u32 %s210_s22, 3 }
  0x19   : > { %s611_s28 = sshll.u32 %s932_s21, 3  ;;  %s214_s7 = scalar_lea.vmem [#allocation2], %s610_s27 }
  0x1a   : > { %s218_s6 = scalar_lea.hbm %s1126_s0, %s611_s28  ;;  %s222_s8 = sshll.u32 %s214_s7, 4  ;;  %s223_s8 = int_to_ptr.vmem [resolvable:$true] %s222_s8 }
  0x1b   : > { %s220_s9 = sshll.u32 %s218_s6, 4  ;;  %p1051_p7 = pnand %p730_p2, %p1024_p11  ;;  %s221_s9 = int_to_ptr.hbm [resolvable:$true] %s220_s9 }
  0x1c   : > { %s211_s11 = scalar_lea.sflag [#allocation3], %s210_s22  ;;  %s832_s13 = sshra.s32 %s221_s9, 4  ;;  %s833_s13 = int_to_ptr.hbm [resolvable:$true] %s832_s13 }
  0x1d   : > { %s834_s14 = scalar_lea.hbm %s833_s13, 8  ;;  %p836_p9 = pneg %p1051_p7 }
  0x1e   : > { %p835_p8 = scmp.ne.s32.totalorder %s833_s13, %s834_s14  ;;  %s839_s29 = scalar_lea.hbm %s1126_s0, 16 }
  0x1f   : > { %p840_p11 = scmp.lt.s32.totalorder %s833_s13, %s1126_s0  ;;  %p841_p0 = scmp.lt.s32.totalorder %s839_s29, %s834_s14 }
  0x20   : > { %p837_p10 = pnand %p836_p9, %p835_p8 }
  0x21   : > { %p842_p2 = por %p841_p0, %p840_p11 }
  0x22   : > { %p838_p13 = pneg %p837_p10 }
  0x24   : > { %p843_p5 = pnand %p842_p2, %p838_p13 }
  0x26   : > { %846 = shalt.err (!%p843_p5)
}
  0x27   : > { %723 = dma.hbm_to_vmem [thread:$0]  (!%p1051_p7), %s221_s9, 128, %s223_s8, %s211_s11  }
  0x28   : > { %231 = sbr.rel (%p997_p3) target bundleno = 882 (0x372), region = 40  ;;  %s1068_s22 = sand.u32 (!%p997_p3), 1, %s924_s19  }
  0x29   : > { %s613_s6 = sshll.u32 (!%p997_p3), %s1068_s22, 3  ;;  %s234_s7 = scalar_lea.sflag (!%p997_p3), [#allocation3], %s1068_s22 }
  0x2a   : > { %s1074_s13 = scalar_lea.vmem (!%p997_p3), [#allocation2], %s613_s6 }
  0x2d   : > { %907 = dma.done.wait (%p1030_p12), %s234_s7, 128  }
  0x2e   : > { %909 = vsyncadd (%p1030_p12), %s234_s7, 4294967168 }
  0x2f   : > { %911 = dma.done.wait (%p43_p1), [#allocation6], 2048  }
  0x30   : > { %913 = vsyncadd (%p43_p1), [#allocation6], 4294965248  ;;  %v692_v0 = vld [vmem:[#allocation5 + $0x38] sm:$0xff]  ;;  %v691_v1 = vld [vmem:[#allocation5 + $0x30] sm:$0xff]  ;;  %s682_s10 = sshll.u32 %s992_s25, 3  ;;  %s274_s28 = scalar_lea.vmem [#allocation8], %s613_s6 }
  0x31   : > { %345 = vmatpush.bf16.msra.mxu0 %v692_v0  ;;  %442 = vmatpush.bf16.msra.mxu2 %v692_v0  ;;  %v700_v2 = vld [vmem:[#allocation7 + $0x38] sm:$0xff]  ;;  %v699_v3 = vld [vmem:[#allocation7 + $0x30] sm:$0xff]  ;;  %v690_v4 = vld [vmem:[#allocation5 + $0x28] sm:$0xff]  ;;  %s511_s27 = scalar_lea.hbm %s1131_s5, %s682_s10  ;;  %s513_s29 = sshll.u32 %s274_s28, 4  ;;  %s514_s29 = int_to_ptr.vmem [resolvable:$true] %s513_s29 }
  0x32   : > { %428 = vmatpush.bf16.msra.mxu1 %v700_v2  ;;  %457 = vmatpush.bf16.msra.mxu3 %v700_v2  ;;  %v698_v5 = vld [vmem:[#allocation7 + $0x28] sm:$0xff]  ;;  %v689_v6 = vld [vmem:[#allocation5 + $0x20] sm:$0xff]  ;;  %v688_v8 = vld [vmem:[#allocation5 + $0x18] sm:$0xff]  ;;  %s515_s30 = sshll.u32 %s511_s27, 4  ;;  %s501_s16 = scalar_lea.sflag [#allocation4], %s1068_s22  ;;  %s516_s30 = int_to_ptr.hbm [resolvable:$true] %s515_s30 }
  0x33   : > { %v697_v7 = vld [vmem:[#allocation7 + $0x20] sm:$0xff]  ;;  %v696_v9 = vld [vmem:[#allocation7 + $0x18] sm:$0xff]  ;;  %v687_v10 = vld [vmem:[#allocation5 + $0x10] sm:$0xff]  ;;  %s876_s7 = sshra.s32 %s516_s30, 4  ;;  %s882_s17 = scalar_lea.hbm %s1131_s5, 16  ;;  %s877_s7 = int_to_ptr.hbm [resolvable:$true] %s876_s7 }
  0x34   : > { %v695_v11 = vld [vmem:[#allocation7 + $0x10] sm:$0xff]  ;;  %v686_v12 = vld [vmem:[#allocation5 + $0x8] sm:$0xff]  ;;  %v685_v13 = vld [vmem:[#allocation5] sm:$0xff]  ;;  %p883_p12 = scmp.lt.s32.totalorder %s877_s7, %s1131_s5 }
  0x35   : > { %346 = vmatpush.bf16.msra.mxu0 %v691_v1  ;;  %443 = vmatpush.bf16.msra.mxu2 %v691_v1  ;;  %v275_v14 = vld [vmem:[%s1074_s13] sm:$0xff]  ;;  %v694_v16 = vld [vmem:[#allocation7 + $0x8] sm:$0xff]  ;;  %v693_v17 = vld [vmem:[#allocation7] sm:$0xff]  ;;  %s878_s13 = scalar_lea.hbm %s877_s7, 8 }
  0x36   : > { %429 = vmatpush.bf16.msra.mxu1 %v699_v3  ;;  %458 = vmatpush.bf16.msra.mxu3 %v699_v3  ;;  %v276_v15 = vpack.c.bf16 %v275_v14, %v275_v14  ;;  %v770_v18 = vld [vmem:[%s1128_s2] ss:$0 sm:$0xff]  ;;  %p879_p1 = scmp.ne.s32.totalorder %s877_s7, %s878_s13  ;;  %p884_p7 = scmp.lt.s32.totalorder %s882_s17, %s878_s13 }
  0x37   : > { %v771_v24 = vld [vmem:[%s1130_s4] ss:$0 sm:$0xff] }
  0x38   : > { %p880_p3 = pnand %p879_p1, %p1037_p4  ;;  %p885_p8 = por %p884_p7, %p883_p12 }
  0x39   : > { %347 = vmatpush.bf16.msra.mxu0 %v690_v4  ;;  %444 = vmatpush.bf16.msra.mxu2 %v690_v4 }
  0x3a   : > { %430 = vmatpush.bf16.msra.mxu1 %v698_v5  ;;  %459 = vmatpush.bf16.msra.mxu3 %v698_v5  ;;  %p881_p5 = pneg %p880_p3 }
  0x3c   : > { %p886_p9 = pnand %p885_p8, %p881_p5 }
  0x3d   : > { %348 = vmatpush.bf16.msra.mxu0 %v689_v6  ;;  %445 = vmatpush.bf16.msra.mxu2 %v689_v6 }
  0x3e   : > { %431 = vmatpush.bf16.msra.mxu1 %v697_v7  ;;  %460 = vmatpush.bf16.msra.mxu3 %v697_v7 }
  0x41   : > { %349 = vmatpush.bf16.msra.mxu0 %v688_v8  ;;  %446 = vmatpush.bf16.msra.mxu2 %v688_v8 }
  0x42   : > { %432 = vmatpush.bf16.msra.mxu1 %v696_v9  ;;  %461 = vmatpush.bf16.msra.mxu3 %v696_v9 }
  0x45   : > { %350 = vmatpush.bf16.msra.mxu0 %v687_v10  ;;  %447 = vmatpush.bf16.msra.mxu2 %v687_v10 }
  0x46   : > { %433 = vmatpush.bf16.msra.mxu1 %v695_v11  ;;  %462 = vmatpush.bf16.msra.mxu3 %v695_v11 }
  0x49   : > { %351 = vmatpush.bf16.msra.mxu0 %v686_v12  ;;  %448 = vmatpush.bf16.msra.mxu2 %v686_v12 }
  0x4a   : > { %434 = vmatpush.bf16.msra.mxu1 %v694_v16  ;;  %463 = vmatpush.bf16.msra.mxu3 %v694_v16 }
  0x4d   : > { %352 = vmatpush.bf16.msra.mxu0 %v685_v13  ;;  %449 = vmatpush.bf16.msra.mxu2 %v685_v13 }
  0x4e   : > { %435 = vmatpush.bf16.msra.mxu1 %v693_v17  ;;  %464 = vmatpush.bf16.msra.mxu3 %v693_v17 }
  0x50   : > { %353 = vmatmul.bf16.vlgmr.msra.gmra.mxu0 %v276_v15 }
  0x51   : > { %471 = vmatpush.bf16.msrb.mxu0 %v692_v0 }
  0x52   : > { %486 = vmatpush.bf16.msrb.mxu1 %v700_v2 }
  0x55   : > { %472 = vmatpush.bf16.msrb.mxu0 %v691_v1 }
  0x56   : > { %487 = vmatpush.bf16.msrb.mxu1 %v699_v3 }
  0x59   : > { %473 = vmatpush.bf16.msrb.mxu0 %v690_v4 }
  0x5a   : > { %488 = vmatpush.bf16.msrb.mxu1 %v698_v5 }
  0x5d   : > { %474 = vmatpush.bf16.msrb.mxu0 %v689_v6 }
  0x5e   : > { %489 = vmatpush.bf16.msrb.mxu1 %v697_v7 }
  0x61   : > { %475 = vmatpush.bf16.msrb.mxu0 %v688_v8 }
  0x62   : > { %490 = vmatpush.bf16.msrb.mxu1 %v696_v9 }
  0x65   : > { %476 = vmatpush.bf16.msrb.mxu0 %v687_v10 }
  0x66   : > { %491 = vmatpush.bf16.msrb.mxu1 %v695_v11 }
  0x69   : > { %477 = vmatpush.bf16.msrb.mxu0 %v686_v12 }
  0x6a   : > { %492 = vmatpush.bf16.msrb.mxu1 %v694_v16 }
  0x6d   : > { %478 = vmatpush.bf16.msrb.mxu0 %v685_v13 }
  0x6e   : > { %493 = vmatpush.bf16.msrb.mxu1 %v693_v17 }
  0xcd   : > { %v354_v19 = vpop.f32.mrf.mxu0 }
  0xce   : > { %v355_v20 = vadd.f32 %v770_v18, %v354_v19 }
  0xd0   : > { %v358_v21 = vmax.f32 %v355_v20, 0.0 }
  0xd2   : > { %v359_v22 = vpack.c.bf16 %v358_v21, %v358_v21 }
  0xd4   : > { %436 = vmatmul.bf16.vlgmr.msra.gmra.mxu1 %v359_v22 }
  0xd5   : > { %v356_v23 = vpop.f32.mrf.mxu0 }
 0x151   : > { %v437_v25 = vpop.f32.mrf.mxu1 }
 0x152   : > { %v438_v26 = vadd.f32 %v771_v24, %v437_v25 }
 0x154   : > { %v441_v27 = vpack.c.bf16 %v438_v26, %v438_v26 }
 0x156   : > { %450 = vmatmul.bf16.vlgmr.msra.gmra.mxu2 %v441_v27 }
 0x159   : > { %v439_v28 = vpop.f32.mrf.mxu1 }
 0x1d9   : > { %v451_v29 = vpop.f32.mrf.mxu2 }
 0x1da   : > { %v452_v30 = vadd.f32 %v770_v18, %v451_v29 }
 0x1dc   : > { %v455_v31 = vmax.f32 %v452_v30, 0.0 }
 0x1de   : > { %v456_v32 = vpack.c.bf16 %v455_v31, %v455_v31 }
 0x1e0   : > { %465 = vmatmul.bf16.vlgmr.msra.gmra.mxu3 %v456_v32 }
 0x1e1   : > { %v453_v33 = vpop.f32.mrf.mxu2 }
 0x263   : > { %v466_v34 = vpop.f32.mrf.mxu3 }
 0x264   : > { %v467_v35 = vadd.f32 %v771_v24, %v466_v34 }
 0x266   : > { %v470_v36 = vpack.c.bf16 %v467_v35, %v467_v35 }
 0x268   : > { %479 = vmatmul.bf16.vlgmr.msrb.gmra.mxu0 %v470_v36 }
 0x26b   : > { %v468_v37 = vpop.f32.mrf.mxu3 }
 0x2e5   : > { %v480_v38 = vpop.f32.mrf.mxu0 }
 0x2e6   : > { %v481_v39 = vadd.f32 %v770_v18, %v480_v38 }
 0x2e8   : > { %v484_v40 = vmax.f32 %v481_v39, 0.0 }
 0x2ea   : > { %v485_v41 = vpack.c.bf16 %v484_v40, %v484_v40 }
 0x2ec   : > { %494 = vmatmul.bf16.vlgmr.msrb.gmra.mxu1 %v485_v41 }
 0x2ed   : > { %v482_v42 = vpop.f32.mrf.mxu0 }
 0x369   : > { %v495_v43 = vpop.f32.mrf.mxu1 }
 0x36a   : > { %v496_v44 = vadd.f32 %v771_v24, %v495_v43 }
 0x36c   : > { %499 = vst [vmem:[%s274_s28] sm:$0xff] %v496_v44 }
 0x36d   : > { %889 = shalt.err (!%p886_p9)
}
 0x36e   : > { %711 = dma.vmem_to_hbm [thread:$0]  (%p1037_p4), %s514_s29, 128, %s516_s30, %s501_s16  }
 0x371   : > { %v497_v45 = vpop.f32.mrf.mxu1 }
 0x372 PF: > { %s527_s22 = sand.u32 1, %s920_s18   ;;  %p1138_p10 = scmp.ge.s32.totalorder %s932_s21, 2 }
 0x373   : > { %s528_s9 = scalar_lea.sflag [#allocation4], %s527_s22 }
 0x374   : > { %p725_p13 = pnand %p1138_p10, %p1041_p6 }
 0x376   : > { %p726_p11 = pneg %p725_p13 }
 0x378   : > { %915 = dma.done.wait (%p726_p11), %s528_s9, 128  }
 0x379   : > { %917 = vsyncadd (%p726_p11), %s528_s9, 4294967168  ;;  %p19_p0 = scmp.ge.s32.totalorder %s1011_s12, 4   ;;  %s1139_s18 = smov %s924_s19 }
 0x37a   : > { %s1140_s19 = smov %s928_s20  ;;  %s1141_s20 = smov %s1022_s15 }
 0x37b   : > { %s1142_s21 = smov %s1011_s12  ;;  %21 = sbr.rel (!%p19_p0) target bundleno = 6 (0x6), region = 93 }
 0x380   :  { %534 = vsyncpa [#allocation3], 1 }
 0x381   :  { %536 = vsyncpa [#allocation3 + $0x1], 1 }
 0x382   :  { %537 = vsyncpa [#allocation6], 1 }
 0x383   :  { %538 = vsyncpa [#allocation4], 1 }
 0x384   :  { %540 = vsyncpa [#allocation4 + $0x1], 1 }

// kernel: tpu_custom_call.1
= control target key start
LH: loop header
LB: loop body
LE: loop exit
PB: predicated region body
PF: predicated region fallthrough
CT: control target
= control target key end

     0   :  { %10 = vsyncpa [#allocation3], 0  ;;  %s1126_s0 = inlined_call_operand.hbm [shape: f32[16,128], index: 0, kind: input, shape index: {}]   ;;  %s1127_s1 = inlined_call_operand.hbm [shape: bf16[128,128], index: 1, kind: input, shape index: {}]   ;;  %s1128_s2 = inlined_call_operand.vmem [shape: f32[1,128], index: 2, kind: input, shape index: {}]   ;;  %s1129_s3 = inlined_call_operand.hbm [shape: bf16[128,128], index: 3, kind: input, shape index: {}]   ;;  %s1130_s4 = inlined_call_operand.vmem [shape: f32[1,128], index: 4, kind: input, shape index: {}]   ;;  %s1131_s5 = inlined_call_operand.hbm [shape: f32[16,128], index: 5, kind: output, shape index: {}]  }
   0x1   :  { %12 = vsyncpa [#allocation3 + $0x1], 0 }
   0x2   :  { %13 = vsyncpa [#allocation6], 0 }
   0x3   :  { %14 = vsyncpa [#allocation4], 0 }
   0x4   :  { %16 = vsyncpa [#allocation4 + $0x1], 0  ;;  %s968_s18 = smov 0   ;;  %s970_s19 = smov 0  }
   0x5   :  { %s972_s20 = smov 0   ;;  %s974_s21 = smov 0  }
   0x6 LB: > { %s174_s24 = sshll.u32 %s1127_s1, 4  ;;  %s992_s25 = sadd.s32 4294967295, %s932_s21   ;;  %s932_s21 = sphi %s974_s21, %s1142_s21   ;;  %s928_s20 = sphi %s972_s20, %s1141_s20   ;;  %s924_s19 = sphi %s970_s19, %s1140_s19   ;;  %s920_s18 = sphi %s968_s18, %s1139_s18   ;;  %s175_s24 = int_to_ptr.hbm [resolvable:$true] %s174_s24 }
   0x7   : > { %p606_p0 = scmp.ge.s32.totalorder %s932_s21, 1  ;;  %p43_p1 = scmp.eq.s32.totalorder %s992_s25, 0 }
   0x8   : > { %p163_p2 = scmp.lt.s32.totalorder %s932_s21, 3  ;;  %s934_s27 = smov [#allocation5]  }
   0x9   : > { %s176_s28 = sshll.u32 %s934_s27, 4  ;;  %s191_s6 = sshll.u32 %s1129_s3, 4  ;;  %s177_s28 = int_to_ptr.vmem [resolvable:$true] %s176_s28  ;;  %s192_s6 = int_to_ptr.hbm [resolvable:$true] %s191_s6 }
   0xa   : > { %p997_p3 = pnand %p606_p0, %p163_p2  ;;  %s935_s7 = smov [#allocation7]  }
   0xb   : > { %s193_s8 = sshll.u32 %s935_s7, 4  ;;  %s936_s9 = smov 64   ;;  %s194_s8 = int_to_ptr.vmem [resolvable:$true] %s193_s8 }
   0xc   : > { %p713_p4 = pneg %p997_p3  ;;  %s937_s10 = smov 4  }
   0xd   : > { %s605_s11 = sadd.s32 4294967294, %s932_s21   ;;  %s1011_s12 = sadd.s32 1, %s932_s21  }
   0xe   : > { %p714_p6 = pnand %p713_p4, %p43_p1  ;;  %s26_s13 = ssub.s32 %s932_s21, %s1011_s12 }
   0xf   : > { %s29_s14 = sadd.s32 1, %s928_s20  ;;  %p27_p7 = scmp.eq.s32.totalorder %s26_s13, 0 }
  0x10   : > { %716 = dma.hbm_to_vmem [thread:$0]  (!%p714_p6), %s175_s24, 1024, %s177_s28, [#allocation6], %s936_s9, %s936_s9, %s937_s10  }
  0x11   : > { %719 = dma.hbm_to_vmem [thread:$0]  (!%p714_p6), %s192_s6, 1024, %s194_s8, [#allocation6], %s936_s9, %s936_s9, %s937_s10  }
  0x12   : > { %p36_p8 = scmp.ne.s32.totalorder %s928_s20, %s924_s19  ;;  %p37_p9 = scmp.eq.s32.totalorder %s932_s21, 0 }
  0x13   : > { %p42_p10 = scmp.ne.s32.totalorder %s924_s19, %s920_s18  ;;  %p150_p13 = scmp.eq.s32.totalorder %s992_s25, 1 }
  0x14   : > { %s1022_s15 = scalar_select %p27_p7, %s928_s20, %s29_s14  }
  0x15   : > { %p1024_p11 = por %p37_p9, %p36_p8  ;;  %p1030_p12 = por %p43_p1, %p42_p10 }
  0x16   : > { %p156_p0 = scmp.eq.s32.totalorder %s605_s11, 1  ;;  %p730_p2 = scmp.lt.s32.totalorder %s932_s21, 2 }
  0x17   : > { %s210_s22 = sand.u32 1, %s928_s20   ;;  %p1037_p4 = por %p150_p13, %p36_p8 }
  0x18   : > { %p1041_p6 = por %p156_p0, %p42_p10  ;;  %s610_s27 = sshll.u32 %s210_s22, 3 }
  0x19   : > { %s611_s28 = sshll.u32 %s932_s21, 3  ;;  %s214_s7 = scalar_lea.vmem [#allocation2], %s610_s27 }
  0x1a   : > { %s218_s6 = scalar_lea.hbm %s1126_s0, %s611_s28  ;;  %s222_s8 = sshll.u32 %s214_s7, 4  ;;  %s223_s8 = int_to_ptr.vmem [resolvable:$true] %s222_s8 }
  0x1b   : > { %s220_s9 = sshll.u32 %s218_s6, 4  ;;  %p1051_p7 = pnand %p730_p2, %p1024_p11  ;;  %s221_s9 = int_to_ptr.hbm [resolvable:$true] %s220_s9 }
  0x1c   : > { %s211_s11 = scalar_lea.sflag [#allocation3], %s210_s22  ;;  %s832_s13 = sshra.s32 %s221_s9, 4  ;;  %s833_s13 = int_to_ptr.hbm [resolvable:$true] %s832_s13 }
  0x1d   : > { %s834_s14 = scalar_lea.hbm %s833_s13, 8  ;;  %p836_p9 = pneg %p1051_p7 }
  0x1e   : > { %p835_p8 = scmp.ne.s32.totalorder %s833_s13, %s834_s14  ;;  %s839_s29 = scalar_lea.hbm %s1126_s0, 16 }
  0x1f   : > { %p840_p11 = scmp.lt.s32.totalorder %s833_s13, %s1126_s0  ;;  %p841_p0 = scmp.lt.s32.totalorder %s839_s29, %s834_s14 }
  0x20   : > { %p837_p10 = pnand %p836_p9, %p835_p8 }
  0x21   : > { %p842_p2 = por %p841_p0, %p840_p11 }
  0x22   : > { %p838_p13 = pneg %p837_p10 }
  0x24   : > { %p843_p5 = pnand %p842_p2, %p838_p13 }
  0x26   : > { %846 = shalt.err (!%p843_p5)
}
  0x27   : > { %723 = dma.hbm_to_vmem [thread:$0]  (!%p1051_p7), %s221_s9, 128, %s223_s8, %s211_s11  }
  0x28   : > { %231 = sbr.rel (%p997_p3) target bundleno = 882 (0x372), region = 40  ;;  %s1068_s22 = sand.u32 (!%p997_p3), 1, %s924_s19  }
  0x29   : > { %s613_s6 = sshll.u32 (!%p997_p3), %s1068_s22, 3  ;;  %s234_s7 = scalar_lea.sflag (!%p997_p3), [#allocation3], %s1068_s22 }
  0x2a   : > { %s1074_s13 = scalar_lea.vmem (!%p997_p3), [#allocation2], %s613_s6 }
  0x2d   : > { %907 = dma.done.wait (%p1030_p12), %s234_s7, 128  }
  0x2e   : > { %909 = vsyncadd (%p1030_p12), %s234_s7, 4294967168 }
  0x2f   : > { %911 = dma.done.wait (%p43_p1), [#allocation6], 2048  }
  0x30   : > { %913 = vsyncadd (%p43_p1), [#allocation6], 4294965248  ;;  %v692_v0 = vld [vmem:[#allocation5 + $0x38] sm:$0xff]  ;;  %v691_v1 = vld [vmem:[#allocation5 + $0x30] sm:$0xff]  ;;  %s682_s10 = sshll.u32 %s992_s25, 3  ;;  %s274_s28 = scalar_lea.vmem [#allocation8], %s613_s6 }
  0x31   : > { %345 = vmatpush.bf16.msra.mxu0 %v692_v0  ;;  %442 = vmatpush.bf16.msra.mxu2 %v692_v0  ;;  %v700_v2 = vld [vmem:[#allocation7 + $0x38] sm:$0xff]  ;;  %v699_v3 = vld [vmem:[#allocation7 + $0x30] sm:$0xff]  ;;  %v690_v4 = vld [vmem:[#allocation5 + $0x28] sm:$0xff]  ;;  %s511_s27 = scalar_lea.hbm %s1131_s5, %s682_s10  ;;  %s513_s29 = sshll.u32 %s274_s28, 4  ;;  %s514_s29 = int_to_ptr.vmem [resolvable:$true] %s513_s29 }
  0x32   : > { %428 = vmatpush.bf16.msra.mxu1 %v700_v2  ;;  %457 = vmatpush.bf16.msra.mxu3 %v700_v2  ;;  %v698_v5 = vld [vmem:[#allocation7 + $0x28] sm:$0xff]  ;;  %v689_v6 = vld [vmem:[#allocation5 + $0x20] sm:$0xff]  ;;  %v688_v8 = vld [vmem:[#allocation5 + $0x18] sm:$0xff]  ;;  %s515_s30 = sshll.u32 %s511_s27, 4  ;;  %s501_s16 = scalar_lea.sflag [#allocation4], %s1068_s22  ;;  %s516_s30 = int_to_ptr.hbm [resolvable:$true] %s515_s30 }
  0x33   : > { %v697_v7 = vld [vmem:[#allocation7 + $0x20] sm:$0xff]  ;;  %v696_v9 = vld [vmem:[#allocation7 + $0x18] sm:$0xff]  ;;  %v687_v10 = vld [vmem:[#allocation5 + $0x10] sm:$0xff]  ;;  %s876_s7 = sshra.s32 %s516_s30, 4  ;;  %s882_s17 = scalar_lea.hbm %s1131_s5, 16  ;;  %s877_s7 = int_to_ptr.hbm [resolvable:$true] %s876_s7 }
  0x34   : > { %v695_v11 = vld [vmem:[#allocation7 + $0x10] sm:$0xff]  ;;  %v686_v12 = vld [vmem:[#allocation5 + $0x8] sm:$0xff]  ;;  %v685_v13 = vld [vmem:[#allocation5] sm:$0xff]  ;;  %p883_p12 = scmp.lt.s32.totalorder %s877_s7, %s1131_s5 }
  0x35   : > { %346 = vmatpush.bf16.msra.mxu0 %v691_v1  ;;  %443 = vmatpush.bf16.msra.mxu2 %v691_v1  ;;  %v275_v14 = vld [vmem:[%s1074_s13] sm:$0xff]  ;;  %v694_v16 = vld [vmem:[#allocation7 + $0x8] sm:$0xff]  ;;  %v693_v17 = vld [vmem:[#allocation7] sm:$0xff]  ;;  %s878_s13 = scalar_lea.hbm %s877_s7, 8 }
  0x36   : > { %429 = vmatpush.bf16.msra.mxu1 %v699_v3  ;;  %458 = vmatpush.bf16.msra.mxu3 %v699_v3  ;;  %v276_v15 = vpack.c.bf16 %v275_v14, %v275_v14  ;;  %v770_v18 = vld [vmem:[%s1128_s2] ss:$0 sm:$0xff]  ;;  %p879_p1 = scmp.ne.s32.totalorder %s877_s7, %s878_s13  ;;  %p884_p7 = scmp.lt.s32.totalorder %s882_s17, %s878_s13 }
  0x37   : > { %v771_v24 = vld [vmem:[%s1130_s4] ss:$0 sm:$0xff] }
  0x38   : > { %p880_p3 = pnand %p879_p1, %p1037_p4  ;;  %p885_p8 = por %p884_p7, %p883_p12 }
  0x39   : > { %347 = vmatpush.bf16.msra.mxu0 %v690_v4  ;;  %444 = vmatpush.bf16.msra.mxu2 %v690_v4 }
  0x3a   : > { %430 = vmatpush.bf16.msra.mxu1 %v698_v5  ;;  %459 = vmatpush.bf16.msra.mxu3 %v698_v5  ;;  %p881_p5 = pneg %p880_p3 }
  0x3c   : > { %p886_p9 = pnand %p885_p8, %p881_p5 }
  0x3d   : > { %348 = vmatpush.bf16.msra.mxu0 %v689_v6  ;;  %445 = vmatpush.bf16.msra.mxu2 %v689_v6 }
  0x3e   : > { %431 = vmatpush.bf16.msra.mxu1 %v697_v7  ;;  %460 = vmatpush.bf16.msra.mxu3 %v697_v7 }
  0x41   : > { %349 = vmatpush.bf16.msra.mxu0 %v688_v8  ;;  %446 = vmatpush.bf16.msra.mxu2 %v688_v8 }
  0x42   : > { %432 = vmatpush.bf16.msra.mxu1 %v696_v9  ;;  %461 = vmatpush.bf16.msra.mxu3 %v696_v9 }
  0x45   : > { %350 = vmatpush.bf16.msra.mxu0 %v687_v10  ;;  %447 = vmatpush.bf16.msra.mxu2 %v687_v10 }
  0x46   : > { %433 = vmatpush.bf16.msra.mxu1 %v695_v11  ;;  %462 = vmatpush.bf16.msra.mxu3 %v695_v11 }
  0x49   : > { %351 = vmatpush.bf16.msra.mxu0 %v686_v12  ;;  %448 = vmatpush.bf16.msra.mxu2 %v686_v12 }
  0x4a   : > { %434 = vmatpush.bf16.msra.mxu1 %v694_v16  ;;  %463 = vmatpush.bf16.msra.mxu3 %v694_v16 }
  0x4d   : > { %352 = vmatpush.bf16.msra.mxu0 %v685_v13  ;;  %449 = vmatpush.bf16.msra.mxu2 %v685_v13 }
  0x4e   : > { %435 = vmatpush.bf16.msra.mxu1 %v693_v17  ;;  %464 = vmatpush.bf16.msra.mxu3 %v693_v17 }
  0x50   : > { %353 = vmatmul.bf16.vlgmr.msra.gmra.mxu0 %v276_v15 }
  0x51   : > { %471 = vmatpush.bf16.msrb.mxu0 %v692_v0 }
  0x52   : > { %486 = vmatpush.bf16.msrb.mxu1 %v700_v2 }
  0x55   : > { %472 = vmatpush.bf16.msrb.mxu0 %v691_v1 }
  0x56   : > { %487 = vmatpush.bf16.msrb.mxu1 %v699_v3 }
  0x59   : > { %473 = vmatpush.bf16.msrb.mxu0 %v690_v4 }
  0x5a   : > { %488 = vmatpush.bf16.msrb.mxu1 %v698_v5 }
  0x5d   : > { %474 = vmatpush.bf16.msrb.mxu0 %v689_v6 }
  0x5e   : > { %489 = vmatpush.bf16.msrb.mxu1 %v697_v7 }
  0x61   : > { %475 = vmatpush.bf16.msrb.mxu0 %v688_v8 }
  0x62   : > { %490 = vmatpush.bf16.msrb.mxu1 %v696_v9 }
  0x65   : > { %476 = vmatpush.bf16.msrb.mxu0 %v687_v10 }
  0x66   : > { %491 = vmatpush.bf16.msrb.mxu1 %v695_v11 }
  0x69   : > { %477 = vmatpush.bf16.msrb.mxu0 %v686_v12 }
  0x6a   : > { %492 = vmatpush.bf16.msrb.mxu1 %v694_v16 }
  0x6d   : > { %478 = vmatpush.bf16.msrb.mxu0 %v685_v13 }
  0x6e   : > { %493 = vmatpush.bf16.msrb.mxu1 %v693_v17 }
  0xcd   : > { %v354_v19 = vpop.f32.mrf.mxu0 }
  0xce   : > { %v355_v20 = vadd.f32 %v770_v18, %v354_v19 }
  0xd0   : > { %v358_v21 = vmax.f32 %v355_v20, 0.0 }
  0xd2   : > { %v359_v22 = vpack.c.bf16 %v358_v21, %v358_v21 }
  0xd4   : > { %436 = vmatmul.bf16.vlgmr.msra.gmra.mxu1 %v359_v22 }
  0xd5   : > { %v356_v23 = vpop.f32.mrf.mxu0 }
 0x151   : > { %v437_v25 = vpop.f32.mrf.mxu1 }
 0x152   : > { %v438_v26 = vadd.f32 %v771_v24, %v437_v25 }
 0x154   : > { %v441_v27 = vpack.c.bf16 %v438_v26, %v438_v26 }
 0x156   : > { %450 = vmatmul.bf16.vlgmr.msra.gmra.mxu2 %v441_v27 }
 0x159   : > { %v439_v28 = vpop.f32.mrf.mxu1 }
 0x1d9   : > { %v451_v29 = vpop.f32.mrf.mxu2 }
 0x1da   : > { %v452_v30 = vadd.f32 %v770_v18, %v451_v29 }
 0x1dc   : > { %v455_v31 = vmax.f32 %v452_v30, 0.0 }
 0x1de   : > { %v456_v32 = vpack.c.bf16 %v455_v31, %v455_v31 }
 0x1e0   : > { %465 = vmatmul.bf16.vlgmr.msra.gmra.mxu3 %v456_v32 }
 0x1e1   : > { %v453_v33 = vpop.f32.mrf.mxu2 }
 0x263   : > { %v466_v34 = vpop.f32.mrf.mxu3 }
 0x264   : > { %v467_v35 = vadd.f32 %v771_v24, %v466_v34 }
 0x266   : > { %v470_v36 = vpack.c.bf16 %v467_v35, %v467_v35 }
 0x268   : > { %479 = vmatmul.bf16.vlgmr.msrb.gmra.mxu0 %v470_v36 }
 0x26b   : > { %v468_v37 = vpop.f32.mrf.mxu3 }
 0x2e5   : > { %v480_v38 = vpop.f32.mrf.mxu0 }
 0x2e6   : > { %v481_v39 = vadd.f32 %v770_v18, %v480_v38 }
 0x2e8   : > { %v484_v40 = vmax.f32 %v481_v39, 0.0 }
 0x2ea   : > { %v485_v41 = vpack.c.bf16 %v484_v40, %v484_v40 }
 0x2ec   : > { %494 = vmatmul.bf16.vlgmr.msrb.gmra.mxu1 %v485_v41 }
 0x2ed   : > { %v482_v42 = vpop.f32.mrf.mxu0 }
 0x369   : > { %v495_v43 = vpop.f32.mrf.mxu1 }
 0x36a   : > { %v496_v44 = vadd.f32 %v771_v24, %v495_v43 }
 0x36c   : > { %499 = vst [vmem:[%s274_s28] sm:$0xff] %v496_v44 }
 0x36d   : > { %889 = shalt.err (!%p886_p9)
}
 0x36e   : > { %711 = dma.vmem_to_hbm [thread:$0]  (%p1037_p4), %s514_s29, 128, %s516_s30, %s501_s16  }
 0x371   : > { %v497_v45 = vpop.f32.mrf.mxu1 }
 0x372 PF: > { %s527_s22 = sand.u32 1, %s920_s18   ;;  %p1138_p10 = scmp.ge.s32.totalorder %s932_s21, 2 }
 0x373   : > { %s528_s9 = scalar_lea.sflag [#allocation4], %s527_s22 }
 0x374   : > { %p725_p13 = pnand %p1138_p10, %p1041_p6 }
 0x376   : > { %p726_p11 = pneg %p725_p13 }
 0x378   : > { %915 = dma.done.wait (%p726_p11), %s528_s9, 128  }
 0x379   : > { %917 = vsyncadd (%p726_p11), %s528_s9, 4294967168  ;;  %p19_p0 = scmp.ge.s32.totalorder %s1011_s12, 4   ;;  %s1139_s18 = smov %s924_s19 }
 0x37a   : > { %s1140_s19 = smov %s928_s20  ;;  %s1141_s20 = smov %s1022_s15 }
 0x37b   : > { %s1142_s21 = smov %s1011_s12  ;;  %21 = sbr.rel (!%p19_p0) target bundleno = 6 (0x6), region = 93 }
 0x380   :  { %534 = vsyncpa [#allocation3], 1 }
 0x381   :  { %536 = vsyncpa [#allocation3 + $0x1], 1 }
 0x382   :  { %537 = vsyncpa [#allocation6], 1 }
 0x383   :  { %538 = vsyncpa [#allocation4], 1 }
 0x384   :  { %540 = vsyncpa [#allocation4 + $0x1], 1 }

</bundles_post_ra>
